<compile_context>
chip_gen: v7x
topology: tpu7x:2x2x1
jax: 0.10.0
libtpu: 0.0.40
codegen_flags: <defaults>
</compile_context>

<pallas_src>
import functools
import math

import jax
import jax.numpy as jnp
from jax.experimental import pallas as pl
from jax.experimental.pallas import tpu as pltpu


# ----------------------------------------------------------------------------
# Fused Pallas kernel: QKV proj + multi-head causal attention + output proj
# ----------------------------------------------------------------------------
def _fused_attention_kernel(
    person_ref,   # (1, T, C)
    group_ref,    # (1, T, C)
    wqkv_ref,     # (C, 3C)  [Wq^T | Wk^T | Wv^T]  (pre-transposed: x @ W)
    bqkv_ref,     # (1, 3C)  [bq | bk | bv]
    wp_ref,       # (C, C)   Wp^T
    bp_ref,       # (1, C)
    o_ref,        # (1, T, C)
    *,
    n_head,
):
    x_p = person_ref[0]   # (T, C)
    x_g = group_ref[0]    # (T, C)
    T, C = x_p.shape
    D = C // n_head
    scale = 1.0 / math.sqrt(D)

    # Fused QKV projection: stack person/group along sublanes -> one matmul.
    # q comes from the person rows, k/v from the group rows; the unused
    # quadrants of the result are simply discarded (FLOPs are negligible at
    # these sizes and we save two MXU issues + two bias broadcasts).
    x = jnp.concatenate([x_p, x_g], axis=0)                       # (2T, C)
    qkv = (
        jnp.dot(x, wqkv_ref[...], preferred_element_type=jnp.float32)
        + bqkv_ref[...]
    )                                                             # (2T, 3C)
    q = qkv[:T, :C]            # (T, C)  from person rows
    k = qkv[T:, C:2 * C]       # (T, C)  from group rows
    v = qkv[T:, 2 * C:]        # (T, C)  from group rows

    # Causal mask computed once per grid step, shared by all heads.
    row = jax.lax.broadcasted_iota(jnp.int32, (T, T), 0)
    col = jax.lax.broadcasted_iota(jnp.int32, (T, T), 1)
    causal = col <= row

    # Per-head attention; n_head is small & static -> unrolled Python loop.
    y_heads = []
    for h in range(n_head):
        qh = q[:, h * D:(h + 1) * D]   # (T, D)
        kh = k[:, h * D:(h + 1) * D]   # (T, D)
        vh = v[:, h * D:(h + 1) * D]   # (T, D)

        # scores: contract last dims directly (no explicit k.T transpose).
        att = jax.lax.dot_general(
            qh, kh, (((1,), (1,)), ((), ())),
            preferred_element_type=jnp.float32,
        ) * scale                      # (T, T)

        att = jnp.where(causal, att, -jnp.inf)

        # Numerically stable softmax (exact division to match the reference
        # bit-closely; the diagonal is always unmasked so max is finite).
        att = att - jnp.max(att, axis=-1, keepdims=True)
        p = jnp.exp(att)
        p = p / jnp.sum(p, axis=-1, keepdims=True)

        y_heads.append(
            jnp.dot(p, vh, preferred_element_type=jnp.float32)   # (T, D)
        )

    # Lane-concat back into (T, C) so the output projection is one full-width
    # MXU matmul instead of n_head skinny ones.
    y = jnp.concatenate(y_heads, axis=-1)                         # (T, C)

    out = jnp.dot(y, wp_ref[...], preferred_element_type=jnp.float32) + bp_ref[...]
    o_ref[0] = out.astype(o_ref.dtype)


# ----------------------------------------------------------------------------
# Wrapper
# ----------------------------------------------------------------------------
def fusion_self_attention(person, group, params, n_head):
    """person, group: (B, T, C).  params: torch-style (out, in) weights."""
    B, T, C = person.shape
    assert C % n_head == 0

    # Pre-transpose weights to (in, out); fuse Q, K, V into one (C, 3C) matmul.
    wqkv_t = jnp.concatenate(
        [params["Wq"].T, params["Wk"].T, params["Wv"].T], axis=1)        # (C, 3C)
    bqkv = jnp.concatenate(
        [params["bq"], params["bk"], params["bv"]]).reshape(1, 3 * C)    # (1, 3C)
    wp_t = params["Wp"].T                                                # (C, C)
    bp = params["bp"].reshape(1, C)

    kernel = functools.partial(_fused_attention_kernel, n_head=n_head)

    x_spec = pl.BlockSpec((1, T, C), lambda b: (b, 0, 0))
    full2d = lambda shape: pl.BlockSpec(shape, lambda b: (0, 0))

    return pl.pallas_call(
        kernel,
        out_shape=jax.ShapeDtypeStruct((B, T, C), person.dtype),
        grid=(B,),
        in_specs=[
            x_spec,                      # person
            x_spec,                      # group
            full2d((C, 3 * C)),          # [Wq^T | Wk^T | Wv^T]
            full2d((1, 3 * C)),          # [bq | bk | bv]
            full2d((C, C)),              # Wp^T
            full2d((1, C)),              # bp
        ],
        out_specs=x_spec,
        compiler_params=pltpu.CompilerParams(
            dimension_semantics=("parallel",)   # batch axis can split across TCs
        ),
    )(person, group, wqkv_t, bqkv, wp_t, bp)


# ----------------------------------------------------------------------------
# Pure-JAX reference (for a sanity check)
# ----------------------------------------------------------------------------
def fusion_self_attention_ref(person, group, params, n_head):
    B, T, C = person.shape
    D = C // n_head

    def lin(x, W, b):
        return x @ W.T + b

    q = lin(person, params["Wq"], params["bq"]).reshape(B, T, n_head, D).transpose(0, 2, 1, 3)
    k = lin(group, params["Wk"], params["bk"]).reshape(B, T, n_head, D).transpose(0, 2, 1, 3)
    v = lin(group, params["Wv"], params["bv"]).reshape(B, T, n_head, D).transpose(0, 2, 1, 3)

    att = (q @ jnp.swapaxes(k, -2, -1)) * (1.0 / math.sqrt(D))
    mask = jnp.tril(jnp.ones((T, T), dtype=bool))
    att = jnp.where(mask[None, None], att, -jnp.inf)
    att = jax.nn.softmax(att, axis=-1)
    y = att @ v
    y = y.transpose(0, 2, 1, 3).reshape(B, T, C)
    return lin(y, params["Wp"], params["bp"])


# ----------------------------------------------------------------------------
# Main
# ----------------------------------------------------------------------------
if __name__ == "__main__":
    # config: n_embd=32, n_head=4, block_size=8  (T == block_size here)
    B, T, C, n_head = 2, 8, 32, 4

    key = jax.random.PRNGKey(0)
    keys = jax.random.split(key, 6)

    def init_linear(k, fan_in, fan_out):
        kw, kb = jax.random.split(k)
        bound = 1.0 / math.sqrt(fan_in)
        W = jax.random.uniform(kw, (fan_out, fan_in), jnp.float32, -bound, bound)
        b = jax.random.uniform(kb, (fan_out,), jnp.float32, -bound, bound)
        return W, b

    Wq, bq = init_linear(keys[0], C, C)
    Wk, bk = init_linear(keys[1], C, C)
    Wv, bv = init_linear(keys[2], C, C)
    Wp, bp = init_linear(keys[3], C, C)
    params = dict(Wq=Wq, bq=bq, Wk=Wk, bk=bk, Wv=Wv, bv=bv, Wp=Wp, bp=bp)

    person = jax.random.normal(keys[4], (B, T, C), jnp.float32)
    group = jax.random.normal(keys[5], (B, T, C), jnp.float32)

    out = fusion_self_attention(person, group, params, n_head)
    out = jax.block_until_ready(out)

    ref = fusion_self_attention_ref(person, group, params, n_head)
    assert out.shape == (B, T, C)
    assert jnp.allclose(out, ref, atol=1e-4, rtol=1e-4), "mismatch vs reference"

    print("KERNEL_OK")
</pallas_src>

<mosaic_0001>
module attributes {stable_mosaic.version = 11 : i64} {
  func.func @_fused_attention_kernel(%arg0: i32, %arg1: memref<1x8x32xf32, #tpu.memory_space<vmem>>, %arg2: memref<1x8x32xf32, #tpu.memory_space<vmem>>, %arg3: memref<32x96xf32, #tpu.memory_space<vmem>>, %arg4: memref<1x96xf32, #tpu.memory_space<vmem>>, %arg5: memref<32x32xf32, #tpu.memory_space<vmem>>, %arg6: memref<1x32xf32, #tpu.memory_space<vmem>>, %arg7: memref<1x8x32xf32, #tpu.memory_space<vmem>>) attributes {dimension_semantics = [#tpu.dimension_semantics<parallel>], iteration_bounds = array<i64: 2>, scalar_prefetch = 0 : i64, scratch_operands = 0 : i64, tpu.core_type = #tpu.core_type<tc>, window_params = [{transform_indices = @transform_0, window_bounds = array<i64: 1, 8, 32>}, {transform_indices = @transform_1, window_bounds = array<i64: 1, 8, 32>}, {pipeline_mode = #tpu.pipeline_mode<synchronous>, transform_indices = @transform_2, window_bounds = array<i64: 32, 96>}, {pipeline_mode = #tpu.pipeline_mode<synchronous>, transform_indices = @transform_3, window_bounds = array<i64: 1, 96>}, {pipeline_mode = #tpu.pipeline_mode<synchronous>, transform_indices = @transform_4, window_bounds = array<i64: 32, 32>}, {pipeline_mode = #tpu.pipeline_mode<synchronous>, transform_indices = @transform_5, window_bounds = array<i64: 1, 32>}, {transform_indices = @transform_6, window_bounds = array<i64: 1, 8, 32>}]} {
    %c0 = arith.constant 0 : index
    %c0_0 = arith.constant 0 : index
    %c0_1 = arith.constant 0 : index
    %0 = vector.load %arg1[%c0, %c0_0, %c0_1] : memref<1x8x32xf32, #tpu.memory_space<vmem>>, vector<1x8x32xf32>
    %1 = vector.shape_cast %0 : vector<1x8x32xf32> to vector<8x32xf32>
    %c0_2 = arith.constant 0 : index
    %c0_3 = arith.constant 0 : index
    %c0_4 = arith.constant 0 : index
    %2 = vector.load %arg2[%c0_2, %c0_3, %c0_4] : memref<1x8x32xf32, #tpu.memory_space<vmem>>, vector<1x8x32xf32>
    %3 = vector.shape_cast %2 : vector<1x8x32xf32> to vector<8x32xf32>
    %4 = tpu.concatenate %1, %3 in 0 : vector<8x32xf32>, vector<8x32xf32> -> vector<16x32xf32>
    %c0_5 = arith.constant 0 : index
    %c0_6 = arith.constant 0 : index
    %5 = vector.load %arg3[%c0_5, %c0_6] : memref<32x96xf32, #tpu.memory_space<vmem>>, vector<32x96xf32>
    %cst = arith.constant dense<0.000000e+00> : vector<16x96xf32>
    %6 = tpu.matmul %4, %5, %cst {dimension_numbers = #tpu.dot_dimension_numbers<[1], [0], [0], [1], [0, 0, 1, 1], [], []>} : vector<16x32xf32>, vector<32x96xf32>, vector<16x96xf32> -> vector<16x96xf32>
    %c0_7 = arith.constant 0 : index
    %c0_8 = arith.constant 0 : index
    %7 = vector.load %arg4[%c0_7, %c0_8] : memref<1x96xf32, #tpu.memory_space<vmem>>, vector<1x96xf32>
    %8 = vector.broadcast %7 : vector<1x96xf32> to vector<16x96xf32>
    %9 = arith.addf %6, %8 : vector<16x96xf32>
    %10 = vector.extract_strided_slice %9 {offsets = [0, 0], sizes = [8, 32], strides = [1, 1]} : vector<16x96xf32> to vector<8x32xf32>
    %11 = vector.extract_strided_slice %9 {offsets = [8, 32], sizes = [8, 32], strides = [1, 1]} : vector<16x96xf32> to vector<8x32xf32>
    %12 = vector.extract_strided_slice %9 {offsets = [8, 64], sizes = [8, 32], strides = [1, 1]} : vector<16x96xf32> to vector<8x32xf32>
    %13 = tpu.iota {dimensions = array<i32: 0>} : vector<8x8xi32>
    %14 = tpu.iota {dimensions = array<i32: 1>} : vector<8x8xi32>
    %15 = arith.cmpi sle, %14, %13 : vector<8x8xi32>
    %16 = vector.extract_strided_slice %10 {offsets = [0, 0], sizes = [8, 8], strides = [1, 1]} : vector<8x32xf32> to vector<8x8xf32>
    %17 = vector.extract_strided_slice %11 {offsets = [0, 0], sizes = [8, 8], strides = [1, 1]} : vector<8x32xf32> to vector<8x8xf32>
    %18 = vector.extract_strided_slice %12 {offsets = [0, 0], sizes = [8, 8], strides = [1, 1]} : vector<8x32xf32> to vector<8x8xf32>
    %cst_9 = arith.constant dense<0.000000e+00> : vector<8x8xf32>
    %19 = tpu.matmul %16, %17, %cst_9 {dimension_numbers = #tpu.dot_dimension_numbers<[1], [1], [0], [0], [0, 0, 1, 0], [], []>} : vector<8x8xf32>, vector<8x8xf32>, vector<8x8xf32> -> vector<8x8xf32>
    %cst_10 = arith.constant 0.353553385 : f32
    %20 = vector.broadcast %cst_10 : f32 to vector<8x8xf32>
    %21 = arith.mulf %19, %20 : vector<8x8xf32>
    %cst_11 = arith.constant 0xFF800000 : f32
    %22 = vector.broadcast %cst_11 : f32 to vector<8x8xf32>
    %23 = arith.select %15, %21, %22 : vector<8x8xi1>, vector<8x8xf32>
    %cst_12 = arith.constant dense<0xFF800000> : vector<8xf32>
    %24 = vector.multi_reduction <maximumf>, %23, %cst_12 [1] : vector<8x8xf32> to vector<8xf32>
    %25 = vector.shape_cast %24 : vector<8xf32> to vector<8x1xf32>
    %26 = vector.broadcast %25 : vector<8x1xf32> to vector<8x8xf32>
    %27 = arith.subf %23, %26 : vector<8x8xf32>
    %28 = math.exp %27 : vector<8x8xf32>
    %cst_13 = arith.constant dense<0.000000e+00> : vector<8xf32>
    %29 = vector.multi_reduction <add>, %28, %cst_13 [1] : vector<8x8xf32> to vector<8xf32>
    %30 = vector.shape_cast %29 : vector<8xf32> to vector<8x1xf32>
    %31 = vector.broadcast %30 : vector<8x1xf32> to vector<8x8xf32>
    %32 = arith.divf %28, %31 : vector<8x8xf32>
    %cst_14 = arith.constant dense<0.000000e+00> : vector<8x8xf32>
    %33 = tpu.matmul %32, %18, %cst_14 {dimension_numbers = #tpu.dot_dimension_numbers<[1], [0], [0], [1], [0, 0, 1, 1], [], []>} : vector<8x8xf32>, vector<8x8xf32>, vector<8x8xf32> -> vector<8x8xf32>
    %34 = vector.extract_strided_slice %10 {offsets = [0, 8], sizes = [8, 8], strides = [1, 1]} : vector<8x32xf32> to vector<8x8xf32>
    %35 = vector.extract_strided_slice %11 {offsets = [0, 8], sizes = [8, 8], strides = [1, 1]} : vector<8x32xf32> to vector<8x8xf32>
    %36 = vector.extract_strided_slice %12 {offsets = [0, 8], sizes = [8, 8], strides = [1, 1]} : vector<8x32xf32> to vector<8x8xf32>
    %cst_15 = arith.constant dense<0.000000e+00> : vector<8x8xf32>
    %37 = tpu.matmul %34, %35, %cst_15 {dimension_numbers = #tpu.dot_dimension_numbers<[1], [1], [0], [0], [0, 0, 1, 0], [], []>} : vector<8x8xf32>, vector<8x8xf32>, vector<8x8xf32> -> vector<8x8xf32>
    %cst_16 = arith.constant 0.353553385 : f32
    %38 = vector.broadcast %cst_16 : f32 to vector<8x8xf32>
    %39 = arith.mulf %37, %38 : vector<8x8xf32>
    %cst_17 = arith.constant 0xFF800000 : f32
    %40 = vector.broadcast %cst_17 : f32 to vector<8x8xf32>
    %41 = arith.select %15, %39, %40 : vector<8x8xi1>, vector<8x8xf32>
    %cst_18 = arith.constant dense<0xFF800000> : vector<8xf32>
    %42 = vector.multi_reduction <maximumf>, %41, %cst_18 [1] : vector<8x8xf32> to vector<8xf32>
    %43 = vector.shape_cast %42 : vector<8xf32> to vector<8x1xf32>
    %44 = vector.broadcast %43 : vector<8x1xf32> to vector<8x8xf32>
    %45 = arith.subf %41, %44 : vector<8x8xf32>
    %46 = math.exp %45 : vector<8x8xf32>
    %cst_19 = arith.constant dense<0.000000e+00> : vector<8xf32>
    %47 = vector.multi_reduction <add>, %46, %cst_19 [1] : vector<8x8xf32> to vector<8xf32>
    %48 = vector.shape_cast %47 : vector<8xf32> to vector<8x1xf32>
    %49 = vector.broadcast %48 : vector<8x1xf32> to vector<8x8xf32>
    %50 = arith.divf %46, %49 : vector<8x8xf32>
    %cst_20 = arith.constant dense<0.000000e+00> : vector<8x8xf32>
    %51 = tpu.matmul %50, %36, %cst_20 {dimension_numbers = #tpu.dot_dimension_numbers<[1], [0], [0], [1], [0, 0, 1, 1], [], []>} : vector<8x8xf32>, vector<8x8xf32>, vector<8x8xf32> -> vector<8x8xf32>
    %52 = vector.extract_strided_slice %10 {offsets = [0, 16], sizes = [8, 8], strides = [1, 1]} : vector<8x32xf32> to vector<8x8xf32>
    %53 = vector.extract_strided_slice %11 {offsets = [0, 16], sizes = [8, 8], strides = [1, 1]} : vector<8x32xf32> to vector<8x8xf32>
    %54 = vector.extract_strided_slice %12 {offsets = [0, 16], sizes = [8, 8], strides = [1, 1]} : vector<8x32xf32> to vector<8x8xf32>
    %cst_21 = arith.constant dense<0.000000e+00> : vector<8x8xf32>
    %55 = tpu.matmul %52, %53, %cst_21 {dimension_numbers = #tpu.dot_dimension_numbers<[1], [1], [0], [0], [0, 0, 1, 0], [], []>} : vector<8x8xf32>, vector<8x8xf32>, vector<8x8xf32> -> vector<8x8xf32>
    %cst_22 = arith.constant 0.353553385 : f32
    %56 = vector.broadcast %cst_22 : f32 to vector<8x8xf32>
    %57 = arith.mulf %55, %56 : vector<8x8xf32>
    %cst_23 = arith.constant 0xFF800000 : f32
    %58 = vector.broadcast %cst_23 : f32 to vector<8x8xf32>
    %59 = arith.select %15, %57, %58 : vector<8x8xi1>, vector<8x8xf32>
    %cst_24 = arith.constant dense<0xFF800000> : vector<8xf32>
    %60 = vector.multi_reduction <maximumf>, %59, %cst_24 [1] : vector<8x8xf32> to vector<8xf32>
    %61 = vector.shape_cast %60 : vector<8xf32> to vector<8x1xf32>
    %62 = vector.broadcast %61 : vector<8x1xf32> to vector<8x8xf32>
    %63 = arith.subf %59, %62 : vector<8x8xf32>
    %64 = math.exp %63 : vector<8x8xf32>
    %cst_25 = arith.constant dense<0.000000e+00> : vector<8xf32>
    %65 = vector.multi_reduction <add>, %64, %cst_25 [1] : vector<8x8xf32> to vector<8xf32>
    %66 = vector.shape_cast %65 : vector<8xf32> to vector<8x1xf32>
    %67 = vector.broadcast %66 : vector<8x1xf32> to vector<8x8xf32>
    %68 = arith.divf %64, %67 : vector<8x8xf32>
    %cst_26 = arith.constant dense<0.000000e+00> : vector<8x8xf32>
    %69 = tpu.matmul %68, %54, %cst_26 {dimension_numbers = #tpu.dot_dimension_numbers<[1], [0], [0], [1], [0, 0, 1, 1], [], []>} : vector<8x8xf32>, vector<8x8xf32>, vector<8x8xf32> -> vector<8x8xf32>
    %70 = vector.extract_strided_slice %10 {offsets = [0, 24], sizes = [8, 8], strides = [1, 1]} : vector<8x32xf32> to vector<8x8xf32>
    %71 = vector.extract_strided_slice %11 {offsets = [0, 24], sizes = [8, 8], strides = [1, 1]} : vector<8x32xf32> to vector<8x8xf32>
    %72 = vector.extract_strided_slice %12 {offsets = [0, 24], sizes = [8, 8], strides = [1, 1]} : vector<8x32xf32> to vector<8x8xf32>
    %cst_27 = arith.constant dense<0.000000e+00> : vector<8x8xf32>
    %73 = tpu.matmul %70, %71, %cst_27 {dimension_numbers = #tpu.dot_dimension_numbers<[1], [1], [0], [0], [0, 0, 1, 0], [], []>} : vector<8x8xf32>, vector<8x8xf32>, vector<8x8xf32> -> vector<8x8xf32>
    %cst_28 = arith.constant 0.353553385 : f32
    %74 = vector.broadcast %cst_28 : f32 to vector<8x8xf32>
    %75 = arith.mulf %73, %74 : vector<8x8xf32>
    %cst_29 = arith.constant 0xFF800000 : f32
    %76 = vector.broadcast %cst_29 : f32 to vector<8x8xf32>
    %77 = arith.select %15, %75, %76 : vector<8x8xi1>, vector<8x8xf32>
    %cst_30 = arith.constant dense<0xFF800000> : vector<8xf32>
    %78 = vector.multi_reduction <maximumf>, %77, %cst_30 [1] : vector<8x8xf32> to vector<8xf32>
    %79 = vector.shape_cast %78 : vector<8xf32> to vector<8x1xf32>
    %80 = vector.broadcast %79 : vector<8x1xf32> to vector<8x8xf32>
    %81 = arith.subf %77, %80 : vector<8x8xf32>
    %82 = math.exp %81 : vector<8x8xf32>
    %cst_31 = arith.constant dense<0.000000e+00> : vector<8xf32>
    %83 = vector.multi_reduction <add>, %82, %cst_31 [1] : vector<8x8xf32> to vector<8xf32>
    %84 = vector.shape_cast %83 : vector<8xf32> to vector<8x1xf32>
    %85 = vector.broadcast %84 : vector<8x1xf32> to vector<8x8xf32>
    %86 = arith.divf %82, %85 : vector<8x8xf32>
    %cst_32 = arith.constant dense<0.000000e+00> : vector<8x8xf32>
    %87 = tpu.matmul %86, %72, %cst_32 {dimension_numbers = #tpu.dot_dimension_numbers<[1], [0], [0], [1], [0, 0, 1, 1], [], []>} : vector<8x8xf32>, vector<8x8xf32>, vector<8x8xf32> -> vector<8x8xf32>
    %88 = tpu.concatenate %33, %51, %69, %87 in 1 : vector<8x8xf32>, vector<8x8xf32>, vector<8x8xf32>, vector<8x8xf32> -> vector<8x32xf32>
    %c0_33 = arith.constant 0 : index
    %c0_34 = arith.constant 0 : index
    %89 = vector.load %arg5[%c0_33, %c0_34] : memref<32x32xf32, #tpu.memory_space<vmem>>, vector<32x32xf32>
    %cst_35 = arith.constant dense<0.000000e+00> : vector<8x32xf32>
    %90 = tpu.matmul %88, %89, %cst_35 {dimension_numbers = #tpu.dot_dimension_numbers<[1], [0], [0], [1], [0, 0, 1, 1], [], []>} : vector<8x32xf32>, vector<32x32xf32>, vector<8x32xf32> -> vector<8x32xf32>
    %c0_36 = arith.constant 0 : index
    %c0_37 = arith.constant 0 : index
    %91 = vector.load %arg6[%c0_36, %c0_37] : memref<1x32xf32, #tpu.memory_space<vmem>>, vector<1x32xf32>
    %92 = vector.broadcast %91 : vector<1x32xf32> to vector<8x32xf32>
    %93 = arith.addf %90, %92 : vector<8x32xf32>
    %c0_38 = arith.constant 0 : index
    %c0_39 = arith.constant 0 : index
    %c0_40 = arith.constant 0 : index
    %94 = vector.load %arg7[%c0_38, %c0_39, %c0_40] : memref<1x8x32xf32, #tpu.memory_space<vmem>>, vector<1x8x32xf32>
    %95 = vector.shape_cast %94 : vector<1x8x32xf32> to vector<8x32xf32>
    %96 = vector.shape_cast %93 : vector<8x32xf32> to vector<1x8x32xf32>
    tpu.vector_store %arg7[%c0_38, %c0_39, %c0_40], %96 {strides = array<i32>} : memref<1x8x32xf32, #tpu.memory_space<vmem>>, vector<1x8x32xf32>,
    return
  }
  func.func @transform_0(%arg0: i32) -> (i32, i32, i32) {
    %c0_i32 = arith.constant 0 : i32
    %c0_i32_0 = arith.constant 0 : i32
    %c0_i32_1 = arith.constant 0 : i32
    return %arg0, %c0_i32, %c0_i32_0 : i32, i32, i32
  }
  func.func @transform_1(%arg0: i32) -> (i32, i32, i32) {
    %c0_i32 = arith.constant 0 : i32
    %c0_i32_0 = arith.constant 0 : i32
    %c0_i32_1 = arith.constant 0 : i32
    return %arg0, %c0_i32, %c0_i32_0 : i32, i32, i32
  }
  func.func @transform_2(%arg0: i32) -> (i32, i32) {
    %c0_i32 = arith.constant 0 : i32
    %c0_i32_0 = arith.constant 0 : i32
    %c0_i32_1 = arith.constant 0 : i32
    return %c0_i32, %c0_i32_0 : i32, i32
  }
  func.func @transform_3(%arg0: i32) -> (i32, i32) {
    %c0_i32 = arith.constant 0 : i32
    %c0_i32_0 = arith.constant 0 : i32
    %c0_i32_1 = arith.constant 0 : i32
    return %c0_i32, %c0_i32_0 : i32, i32
  }
  func.func @transform_4(%arg0: i32) -> (i32, i32) {
    %c0_i32 = arith.constant 0 : i32
    %c0_i32_0 = arith.constant 0 : i32
    %c0_i32_1 = arith.constant 0 : i32
    return %c0_i32, %c0_i32_0 : i32, i32
  }
  func.func @transform_5(%arg0: i32) -> (i32, i32) {
    %c0_i32 = arith.constant 0 : i32
    %c0_i32_0 = arith.constant 0 : i32
    %c0_i32_1 = arith.constant 0 : i32
    return %c0_i32, %c0_i32_0 : i32, i32
  }
  func.func @transform_6(%arg0: i32) -> (i32, i32, i32) {
    %c0_i32 = arith.constant 0 : i32
    %c0_i32_0 = arith.constant 0 : i32
    %c0_i32_1 = arith.constant 0 : i32
    return %arg0, %c0_i32, %c0_i32_0 : i32, i32, i32
  }
}

</mosaic_0001>

<bundles_post_ra>
// kernel: tpu_custom_call.1
= control target key start
LH: loop header
LB: loop body
LE: loop exit
PB: predicated region body
PF: predicated region fallthrough
CT: control target
= control target key end

     0   :  { %s2179_s0 = inlined_call_operand.hbm [shape: f32[2,8,32], index: 0, kind: input, shape index: {}]   ;;  %s2180_s1 = inlined_call_operand.hbm [shape: f32[2,8,32], index: 1, kind: input, shape index: {}]   ;;  %s2181_s2 = inlined_call_operand.hbm [shape: f32[32,96], index: 2, kind: input, shape index: {}]   ;;  %s2182_s3 = inlined_call_operand.vmem [shape: f32[1,96], index: 3, kind: input, shape index: {}]   ;;  %s2183_s4 = inlined_call_operand.hbm [shape: f32[32,32], index: 4, kind: input, shape index: {}]   ;;  %s2184_s5 = inlined_call_operand.vmem [shape: f32[1,32], index: 5, kind: input, shape index: {}]   ;;  %s2185_s6 = inlined_call_operand.hbm [shape: f32[2,8,32], index: 6, kind: output, shape index: {}]  }
   0x1   :  { %2190 = sst [smem:[#allocation17_spill]] %s2181_s2 }
   0x2   :  { %2191 = sst [smem:[#allocation18_spill]] %s2183_s4 }
   0x3   :  { %11 = vsyncpa [#allocation3], 0 }
   0x4   :  { %13 = vsyncpa [#allocation3 + $0x1], 0 }
   0x5   :  { %14 = vsyncpa [#allocation6], 0 }
   0x6   :  { %16 = vsyncpa [#allocation6 + $0x1], 0 }
   0x7   :  { %17 = vsyncpa [#allocation9], 0 }
   0x8   :  { %18 = vsyncpa [#allocation4], 0 }
   0x9   :  { %20 = vsyncpa [#allocation4 + $0x1], 0  ;;  %s1831_s21 = smov 0   ;;  %s1833_s22 = smov 0  }
   0xa   :  { %s1835_s23 = smov 0   ;;  %s1837_s24 = smov 0  }
   0xb LB: > { %s1852_s25 = sadd.s32 4294967295, %s1770_s24   ;;  %s1330_s26 = sadd.s32 4294967294, %s1770_s24   ;;  %s1770_s24 = sphi %s1837_s24, %s2215_s24   ;;  %s1766_s23 = sphi %s1835_s23, %s2214_s23   ;;  %s1762_s22 = sphi %s1833_s22, %s2213_s22   ;;  %s1758_s21 = sphi %s1831_s21, %s2212_s21  }
   0xc   : > { %p46_p0 = scmp.ne.s32.totalorder %s1762_s22, %s1758_s21  ;;  %p2186_p1 = scmp.eq.s32.totalorder %s1852_s25, 0 }
   0xd   : > { %p186_p3 = scmp.eq.s32.totalorder %s1330_s26, 1  ;;  %p1331_p5 = scmp.ge.s32.totalorder %s1770_s24, 1 }
   0xe   : > { %p1861_p4 = por %p2186_p1, %p46_p0  ;;  %p193_p7 = scmp.lt.s32.totalorder %s1770_s24, 3 }
   0xf   : > { %p1866_p6 = por %p186_p3, %p46_p0  ;;  %s1772_s30 = smov [#allocation7]  }
  0x10   : > { %s2192_s27 = scalar_select %p1861_p4, 1, 0 }
  0x11   : > { %s2193_s28 = scalar_select %p1866_p6, 1, 0 }
  0x12   : > { %p1871_p8 = pnand %p1331_p5, %p193_p7  ;;  %s205_s7 = sshll.u32 %s1772_s30, 4  ;;  %s1875_s7 = int_to_ptr.vmem [resolvable:$true] %s205_s7 }
  0x13   : > { %s1773_s9 = smov [#allocation8]   ;;  %s2196_s2 = sld [smem:[#allocation17_spill]] }
  0x14   : > { %s2194_s29 = scalar_select %p1871_p8, 1, 0 }
  0x15   : > { %p1483_p9 = pneg %p1871_p8  ;;  %s221_s10 = sshll.u32 %s1773_s9, 4  ;;  %s1886_s10 = int_to_ptr.vmem [resolvable:$true] %s221_s10 }
  0x17   : > { %p1882_p11 = pnand %p1483_p9, %p2186_p1 }
  0x19   : > { %s1576_s13 = scalar_lea.hbm %s2196_s2, 512  ;;  %p1578_p13 = pneg %p1882_p11 }
  0x1a   : > { %p1577_p12 = scmp.ne.s32.totalorder %s2196_s2, %s1576_s13  ;;  %p1583_p5 = scmp.lt.u32.totalorder %s1576_s13, %s2196_s2 }
  0x1c   : > { %p1579_p0 = pnand %p1578_p13, %p1577_p12 }
  0x1e   : > { %p1580_p3 = pneg %p1579_p0 }
  0x20   : > { %p1585_p7 = pnand %p1583_p5, %p1580_p3 }
  0x22   : > { %1588 = shalt.err (!%p1585_p7)
}
  0x23   : > { %s1589_s18 = scalar_lea.vmem %s1875_s7, 512  ;;  %p1597_p2 = scmp.lt.s32.totalorder %s1875_s7, %s1875_s7 }
  0x24   : > { %p1590_p9 = scmp.ne.s32.totalorder %s1875_s7, %s1589_s18  ;;  %p1598_p12 = scmp.lt.s32.totalorder %s1589_s18, %s1589_s18 }
  0x26   : > { %p1592_p10 = pnand %p1590_p9, %p1578_p13  ;;  %p1599_p0 = por %p1598_p12, %p1597_p2 }
  0x28   : > { %p1593_p1 = pneg %p1592_p10 }
  0x2a   : > { %p1600_p6 = pnand %p1599_p0, %p1593_p1 }
  0x2c   : > { %1603 = shalt.err (!%p1600_p6)
}
  0x2d   : > { %s1774_s19 = smov 128   ;;  %s1775_s20 = smov 8  }
  0x2e   : > { %1486 = dma.hbm_to_vmem [thread:$0]  (!%p1882_p11), %s2196_s2, 512, %s1875_s7, [#allocation6], %s1774_s19, %s1774_s19, %s1775_s20  }
  0x2f   : > { %s2197_s4 = sld [smem:[#allocation18_spill]] }
  0x35   : > { %s1604_s12 = scalar_lea.hbm %s2197_s4, 512 }
  0x36   : > { %p1605_p2 = scmp.ne.s32.totalorder %s2197_s4, %s1604_s12  ;;  %p1611_p10 = scmp.lt.u32.totalorder %s1604_s12, %s2197_s4 }
  0x38   : > { %p1607_p1 = pnand %p1605_p2, %p1578_p13 }
  0x3a   : > { %p1608_p6 = pneg %p1607_p1 }
  0x3c   : > { %p1613_p3 = pnand %p1611_p10, %p1608_p6 }
  0x3e   : > { %1616 = shalt.err (!%p1613_p3)
}
  0x3f   : > { %s1617_s7 = scalar_lea.vmem %s1886_s10, 512  ;;  %p1625_p12 = scmp.lt.s32.totalorder %s1886_s10, %s1886_s10 }
  0x40   : > { %p1618_p5 = scmp.ne.s32.totalorder %s1886_s10, %s1617_s7  ;;  %p1626_p0 = scmp.lt.s32.totalorder %s1617_s7, %s1617_s7 }
  0x42   : > { %p1620_p7 = pnand %p1618_p5, %p1578_p13  ;;  %p1627_p2 = por %p1626_p0, %p1625_p12 }
  0x44   : > { %p1621_p9 = pneg %p1620_p7 }
  0x46   : > { %p1628_p1 = pnand %p1627_p2, %p1621_p9 }
  0x48   : > { %1631 = shalt.err (!%p1628_p1)
}
  0x49   : > { %1489 = dma.hbm_to_vmem [thread:$0]  (!%p1882_p11), %s2197_s4, 512, %s1886_s10, [#allocation9], %s1774_s19, %s1774_s19, %s1775_s20  }
  0x4a   : > { %s1941_s26 = sadd.s32 1, %s1770_s24   ;;  %s33_s8 = sadd.s32 1, %s1766_s23 }
  0x4b   : > { %s30_s30 = ssub.s32 %s1770_s24, %s1941_s26  ;;  %p40_p13 = scmp.ne.s32.totalorder %s1766_s23, %s1762_s22 }
  0x4c   : > { %p31_p6 = scmp.eq.s32.totalorder %s30_s30, 0  ;;  %p41_p10 = scmp.eq.s32.totalorder %s1770_s24, 0 }
  0x4d   : > { %p2198_p3 = scmp.eq.s32.totalorder %s1852_s25, 1  ;;  %p1503_p7 = scmp.lt.s32.totalorder %s1770_s24, 2 }
  0x4e   : > { %s1957_s11 = scalar_select %p31_p6, %s1766_s23, %s33_s8  }
  0x4f   : > { %p1951_p5 = por %p2198_p3, %p40_p13  ;;  %p42_p9 = por %p41_p10, %p40_p13 }
  0x50   : > { %2200 = sst [smem:[#allocation16_spill]] %s1957_s11  ;;  %s238_s12 = sand.u32 1, %s1766_s23  }
  0x51   : > { %s2199_s9 = scalar_select %p1951_p5, 1, 0 }
  0x52   : > { %s1960_s10 = sshll.u32 %s238_s12, 3  ;;  %s1336_s19 = sshll.u32 %s1770_s24, 7 }
  0x53   : > { %s1966_s14 = scalar_lea.hbm %s2179_s0, %s1336_s19  ;;  %s242_s15 = scalar_lea.vmem [#allocation2], %s1960_s10 }
  0x54   : > { %s249_s16 = sshll.u32 %s242_s15, 4  ;;  %p1971_p11 = pnand %p1503_p7, %p42_p9  ;;  %s1969_s16 = int_to_ptr.vmem [resolvable:$true] %s249_s16 }
  0x55   : > { %s1978_s8 = scalar_lea.hbm %s2180_s1, %s1336_s19  ;;  %s256_s30 = sand.u32 1, %s1770_s24  }
  0x56   : > { %s239_s20 = scalar_lea.sflag [#allocation3], %s238_s12  ;;  %s1632_s13 = scalar_lea.hbm %s1966_s14, 128 }
  0x57   : > { %p1633_p12 = scmp.ne.s32.totalorder %s1966_s14, %s1632_s13  ;;  %p1634_p0 = pneg %p1971_p11 }
  0x58   : > { %s1637_s4 = scalar_lea.hbm %s2179_s0, 256  ;;  %p1638_p13 = scmp.lt.u32.totalorder %s1966_s14, %s2179_s0 }
  0x59   : > { %p1635_p2 = pnand %p1634_p0, %p1633_p12  ;;  %p1639_p6 = scmp.lt.u32.totalorder %s1637_s4, %s1632_s13 }
  0x5a   : > { %p1641_p3 = scmp.lt.u32.totalorder %s1632_s13, %s1966_s14 }
  0x5b   : > { %p1636_p1 = pneg %p1635_p2  ;;  %p1640_p10 = por %p1639_p6, %p1638_p13 }
  0x5d   : > { %p1642_p7 = por %p1641_p3, %p1640_p10 }
  0x5f   : > { %p1643_p9 = pnand %p1642_p7, %p1636_p1 }
  0x61   : > { %1646 = shalt.err (!%p1643_p9)
}
  0x62   : > { %s1647_s12 = scalar_lea.vmem %s1969_s16, 128  ;;  %s1776_s2 = smov [#allocation2]  }
  0x63   : > { %p1648_p12 = scmp.ne.s32.totalorder %s1969_s16, %s1647_s12  ;;  %s1652_s19 = sshll.u32 %s1776_s2, 4  ;;  %s1653_s19 = int_to_ptr.vmem [resolvable:$false] %s1652_s19 }
  0x64   : > { %s1654_s11 = scalar_lea.vmem %s1653_s19, 256  ;;  %p1655_p4 = scmp.lt.s32.totalorder %s1969_s16, %s1653_s19 }
  0x65   : > { %p1650_p2 = pnand %p1648_p12, %p1634_p0  ;;  %p1656_p13 = scmp.lt.s32.totalorder %s1654_s11, %s1647_s12 }
  0x67   : > { %p1651_p5 = pneg %p1650_p2  ;;  %p1657_p6 = por %p1656_p13, %p1655_p4 }
  0x69   : > { %p1658_p10 = pnand %p1657_p6, %p1651_p5 }
  0x6b   : > { %1661 = shalt.err (!%p1658_p10)
}
  0x6c   : > { %1493 = dma.hbm_to_vmem [thread:$0]  (!%p1971_p11), %s1966_s14, 128, %s1969_s16, %s239_s20  }
  0x6d   : > { %s260_s4 = scalar_lea.vmem [#allocation5], %s1960_s10  ;;  %s257_s13 = scalar_lea.sflag [#allocation6], %s256_s30 }
  0x6e   : > { %s267_s18 = sshll.u32 %s260_s4, 4  ;;  %s1662_s15 = scalar_lea.hbm %s1978_s8, 128  ;;  %s268_s18 = int_to_ptr.vmem [resolvable:$true] %s267_s18 }
  0x6f   : > { %p1663_p4 = scmp.ne.s32.totalorder %s1978_s8, %s1662_s15  ;;  %s1667_s2 = scalar_lea.hbm %s2180_s1, 256 }
  0x70   : > { %p1668_p3 = scmp.lt.u32.totalorder %s1978_s8, %s2180_s1  ;;  %p1669_p7 = scmp.lt.u32.totalorder %s1667_s2, %s1662_s15 }
  0x71   : > { %p1665_p5 = pnand %p1663_p4, %p1634_p0  ;;  %p1671_p12 = scmp.lt.u32.totalorder %s1662_s15, %s1978_s8 }
  0x72   : > { %p1670_p9 = por %p1669_p7, %p1668_p3 }
  0x73   : > { %p1666_p1 = pneg %p1665_p5 }
  0x74   : > { %p1672_p2 = por %p1671_p12, %p1670_p9 }
  0x76   : > { %p1673_p13 = pnand %p1672_p2, %p1666_p1 }
  0x78   : > { %1676 = shalt.err (!%p1673_p13)
}
  0x79   : > { %s1677_s10 = scalar_lea.vmem %s268_s18, 128  ;;  %s1777_s14 = smov [#allocation5]  }
  0x7a   : > { %p1678_p6 = scmp.ne.s32.totalorder %s268_s18, %s1677_s10  ;;  %s1682_s16 = sshll.u32 %s1777_s14, 4  ;;  %s1683_s16 = int_to_ptr.vmem [resolvable:$false] %s1682_s16 }
  0x7b   : > { %s1684_s30 = scalar_lea.vmem %s1683_s16, 256  ;;  %p1685_p5 = scmp.lt.s32.totalorder %s268_s18, %s1683_s16 }
  0x7c   : > { %p1680_p10 = pnand %p1678_p6, %p1634_p0  ;;  %p1686_p8 = scmp.lt.s32.totalorder %s1684_s30, %s1677_s10 }
  0x7e   : > { %p1681_p4 = pneg %p1680_p10  ;;  %p1687_p3 = por %p1686_p8, %p1685_p5 }
  0x80   : > { %p1688_p7 = pnand %p1687_p3, %p1681_p4 }
  0x82   : > { %1691 = shalt.err (!%p1688_p7)
}
  0x83   : > { %1496 = dma.hbm_to_vmem [thread:$0]  (!%p1971_p11), %s1978_s8, 128, %s268_s18, %s257_s13  }
  0x84   : > { %p2202_p1 = scmp.ne.s32.totalorder %s2194_s29, 0 }
  0x85   : > { %s2031_s20 = sand.u32 (!%p2202_p1), 1, %s1762_s22   ;;  %p2203_p8 = scmp.ne.s32.totalorder (!%p2202_p1), %s2192_s27, 0 }
  0x86   : > { %276 = sbr.rel (%p2202_p1) target bundleno = 2161 (0x871), region = 44  ;;  %s2034_s4 = sshll.u32 (!%p2202_p1), %s2031_s20, 3 }
  0x87   : > { %s279_s15 = scalar_lea.sflag (!%p2202_p1), [#allocation3], %s2031_s20  ;;  %s282_s17 = scalar_lea.vmem (!%p2202_p1), [#allocation2], %s2034_s4 }
  0x8d   : > { %1737 = dma.done.wait (%p2203_p8), %s279_s15, 128  }
  0x8e   : > { %1739 = vsyncadd (%p2203_p8), %s279_s15, 4294967168  ;;  %s287_s29 = sand.u32 1, %s1852_s25   ;;  %s291_s8 = scalar_lea.vmem [#allocation5], %s2034_s4 }
  0x8f   : > { %s288_s7 = scalar_lea.sflag [#allocation6], %s287_s29 }
  0x90   : > { %1741 = dma.done.wait (%p2203_p8), %s288_s7, 128  }
  0x91   : > { %1743 = vsyncadd (%p2203_p8), %s288_s7, 4294967168  ;;  %p2204_p11 = scmp.eq.s32.totalorder %s1852_s25, 0 }
  0x93   : > { %1745 = dma.done.wait (%p2204_p11), [#allocation6], 512   ;;  %p2205_p0 = pmov %p2204_p11 }
  0x95   : > { %1747 = vsyncadd (%p2205_p0), [#allocation6], 4294966784  ;;  %p2206_p9 = pmov %p2205_p0 }
  0x96   : > { %p2207_p12 = pmov %p2205_p0 }
  0x97   : > { %1749 = dma.done.wait (%p2206_p9), [#allocation9], 512  }
  0x98   : > { %1751 = vsyncadd (%p2207_p12), [#allocation9], 4294966784  ;;  %vm346_vm0 = vcmask 261120   ;;  %v335_v0 = vld [vmem:[#allocation7] sm:$0xff]  ;;  %v336_v1 = vld [vmem:[#allocation7 + $0x8] sm:$0xff]  ;;  %v1778_v8 = vmov 0.0   ;;  %v428_v19 = vlaneseq }
  0x99   : > { %v337_v2 = vld [vmem:[#allocation7 + $0x10] sm:$0xff]  ;;  %v1455_v3 = vpack.c.bf16 %v336_v1, %v335_v0  ;;  %v338_v4 = vld [vmem:[#allocation7 + $0x18] sm:$0xff]  ;;  %v333_v5 = vld [vmem:[%s282_s17] sm:$0xff]  ;;  %1404 = vmatprep.subr.mxu1 %v1778_v8  ;;  %vm1779_vm1 = vmmov 0   ;;  %s1780_s13 = smov 64   ;;  %s1781_s12 = smov 96  }
  0x9a   : > { %v1459_v6 = vpack.c.bf16 %v338_v4, %v337_v2  ;;  %1401 = vmatprep.mubr.msk.f32.mxu0 %vm346_vm0, %v333_v5  ;;  %v334_v7 = vld [vmem:[%s291_s8] sm:$0xff]  ;;  %1406 = vmatprep.mubr.msk.f32.mxu1 %vm1779_vm1, %v1778_v8  ;;  %v1345_v9 = vld [vmem:[%s2182_s3] ss:$0 sm:$0xff]  ;;  %s1782_s2 = smov 88   ;;  %s1783_s19 = smov 120   ;;  %vm436_vm2 = vcmask 64512  }
  0x9b   : > { %1456 = vmatprep.subr.bf16.mxu0 %v1455_v3  ;;  %s1784_s11 = smov 80   ;;  %v429_v20 = vshrl.u32 %v428_v19, 7  ;;  %v431_v21 = vand.u32 127, %v428_v19  ;;  %s1785_s10 = smov 72   ;;  %v1119_v19 = vld [vmem:[#allocation8] sm:$0xff]  ;;  %vm1115_vm4 = vcmask 130048  }
  0x9c   : > { %1458 = vmatpush3.bf16.msra.mxu0 %v1455_v3  ;;  %s1786_s14 = smov 112   ;;  %s1787_s16 = smov 104   ;;  %vm1117_vm5 = vcmask 195584  }
  0x9d   : > { %1460 = vmatprep.subr.bf16.mxu0 %v1459_v6  ;;  %vm432_vm3 = vcmp.le.s32.totalorder %v431_v21, %v429_v20  ;;  %s1788_s30 = smov 56   ;;  %s1789_s15 = smov 48   ;;  %v1120_v20 = vld [vmem:[#allocation8 + $0x8] sm:$0xff]  ;;  %v1791_v21 = vmov 0.0|0.0  }
  0x9e   : > { %s1790_s17 = smov 40   ;;  %s1792_s29 = smov 8  }
  0x9f   : > { %s1793_s7 = smov 16   ;;  %s1794_s8 = smov 24  }
  0xa0   : > { %1462 = vmatpush3.bf16.msra.mxu0 %v1459_v6  ;;  %p2208_p13 = scmp.ne.s32.totalorder %s2199_s9, 0 }
  0xa1   : > { %1424 = vmatprep.subr.mxu0 %v1778_v8 }
  0xa3   : > { %1402 = vmatmul.mubr.msk.f32.vlgmr.msra.gmra.mrb[0].mxu0 %vm346_vm0, %v334_v7 }
  0xa4   : > { %1426 = vmatprep.mubr.msk.f32.mxu0 %vm1779_vm1, %v1778_v8 }
 0x176   : > { %v1403_v10 = vpop.f32.mrb[0].mxu0 }
 0x177   : > { %v2067_v11 = vadd.f32 %v1403_v10, %v1345_v9  ;;  %v419_v12 = vpop.f32.mrb[1].mxu0 }
 0x178   : > { %v420_v13 = vadd.f32 %v1345_v9, %v419_v12 }
 0x179   : > { %525 = vrot.lane.b32.xlu1 %v2067_v11, %s1780_s13  ;;  %434 = vrot.lane.b32.xlu0 %v2067_v11, %s1781_s12  ;;  %s1363_s13 = sshll.u32 %s1852_s25, 7  ;;  %s332_s12 = scalar_lea.vmem [#allocation10], %s2034_s4 }
 0x17a   : > { %s1795_s25 = smov [#allocation10]  }
 0x17b   : > { %s1696_s4 = sshll.u32 %s1795_s25, 4  ;;  %s1697_s4 = int_to_ptr.vmem [resolvable:$false] %s1696_s4 }
 0x17d   : > { %603 = vrot.lane.b32.xlu1 %v2067_v11, %s1782_s2  ;;  %s1218_s2 = sshll.u32 %s332_s12, 4  ;;  %s2136_s2 = int_to_ptr.vmem [resolvable:$true] %s1218_s2 }
 0x17e   : > { %p1699_p4 = scmp.lt.s32.totalorder %s2136_s2, %s1697_s4 }
 0x181   : > { %601 = vrot.lane.b32.xlu1 %v420_v13, %s1783_s19 }
 0x185   : > { %770 = vrot.lane.b32.xlu1 %v2067_v11, %s1784_s11 }
 0x1eb   : > { %v526_v14 = vpop.permute.xlu1 %525  ;;  %v435_v15 = vpop.permute.xlu0 %434 }
 0x1ec   : > { %1405 = vmatpush3.xpose.msk.msra.mxu1 %vm436_vm2, %v435_v15 }
 0x1ed   : > { %1409 = vmatprep.subr.mxu1 %v1778_v8 }
 0x1ef   : > { %v604_v16 = vpop.permute.xlu1 %603  ;;  %1407 = vmatmul.mubr.msk.f32.vlgmr.msra.gmra.mrb[0].mxu1 %vm436_vm2, %v420_v13 }
 0x1f0   : > { %1410 = vmatpush3.msra.mxu1 %v526_v14  ;;  %1411 = vmatprep.mubr.msk.f32.mxu1 %vm1779_vm1, %v1778_v8 }
 0x1f1   : > { %1414 = vmatprep.subr.mxu1 %v1778_v8 }
 0x1f3   : > { %v602_v17 = vpop.permute.xlu1 %601 }
 0x1f7   : > { %v771_v18 = vpop.permute.xlu1 %770 }
 0x1f8   : > { %1425 = vmatpush3.xpose.msk.msra.mxu0 %vm436_vm2, %v771_v18 }
 0x1f9   : > { %1434 = vmatprep.subr.mxu0 %v1778_v8 }
 0x2c2   : > { %v508_v22 = vpop.f32.mrb[0].mxu1 }
 0x2c3   : > { %v512_v23 = vmul.f32 0.35355338, %v508_v22  ;;  %v1408_v24 = vpop.f32.mrb[1].mxu1  ;;  %v1464_v22 = vpack.c.bf16 %v1120_v20, %v1119_v19 }
 0x2c4   : > { %v1122_v24 = vld [vmem:[#allocation8 + $0x18] sm:$0xff] }
 0x2c5   : > { %v513_v25 = vsel %vm432_vm3, %v512_v23, -inf  ;;  %v1121_v23 = vld [vmem:[#allocation8 + $0x10] sm:$0xff] }
 0x2c6   : > { %v514_v26 = vsel %vm436_vm2, %v513_v25, -inf }
 0x2c7   : > { %515 = vmax.xlane.f32.xlu0 %v514_v26 }
 0x2dd   : > { %937 = vrot.lane.b32.xlu0 %v2067_v11, %s1785_s10  ;;  %s2134_s10 = scalar_lea.hbm %s2185_s6, %s1363_s13 }
 0x354   : > { %v516_v27 = vpop.xlane.xlu0 %515 }
 0x355   : > { %v517_v28 = vsub.f32 %v513_v25, %v516_v27  ;;  %v1467_v25 = vpack.c.bf16 %v1122_v24, %v1121_v23 }
 0x357   : > { %v518_v29 = vmul.f32 1.442695, %v517_v28 }
 0x358   : > { %v938_v34 = vpop.permute.xlu0 %937 }
 0x359   : > { %1560 = vpow2.f32 %v518_v29 }
 0x363   : > { %v1561_v30 = vpop.eup %1560 }
 0x364   : > { %v520_v31 = vsel %vm436_vm2, %v1561_v30, 0.0 }
 0x365   : > { %521 = vadd.xlane.f32.xlu1 %v520_v31 }
 0x376   : > { %768 = vrot.lane.b32.xlu1 %v420_v13, %s1786_s14  ;;  %s1205_s14 = scalar_lea.sflag [#allocation4], %s2031_s20 }
 0x37a   : > { %935 = vrot.lane.b32.xlu1 %v420_v13, %s1787_s16  ;;  %s1692_s16 = scalar_lea.vmem %s2136_s2, 128 }
 0x37b   : > { %p1693_p2 = scmp.ne.s32.totalorder %s2136_s2, %s1692_s16 }
 0x37d   : > { %p1694_p6 = pnand %p1693_p2, %p2208_p13 }
 0x37f   : > { %p1695_p10 = pneg %p1694_p6 }
 0x3f2   : > { %v522_v32 = vpop.xlane.xlu1 %521 }
 0x3f3   : > { %1562 = vrcp.f32 %v522_v32 }
 0x3f6   : > { %v769_v33 = vpop.permute.xlu1 %768 }
 0x3f7   : > { %1427 = vmatmul.mubr.msk.f32.vlgmr.msra.gmra.mrb[2].mxu0 %vm436_vm2, %v769_v33 }
 0x3f8   : > { %1435 = vmatpush3.xpose.msk.msra.mxu0 %vm436_vm2, %v938_v34  ;;  %1436 = vmatprep.mubr.msk.f32.mxu0 %vm1779_vm1, %v1778_v8 }
 0x3f9   : > { %1463 = vmatprep.subr.bf16.mxu0 %v1791_v21 }
 0x3fa   : > { %v936_v35 = vpop.permute.xlu1 %935 }
 0x3fb   : > { %1437 = vmatmul.mubr.msk.f32.vlgmr.msra.gmra.mrb[4].mxu0 %vm436_vm2, %v936_v35 }
 0x3fc   : > { %1452 = vmatprep.mubr.msk.f32.mxu0 %vm1779_vm1, %v1778_v8  ;;  %1465 = vmatpush3.bf16.msra.mxu0 %v1464_v22 }
 0x3fd   : > { %v1563_v36 = vpop.eup %1562  ;;  %1466 = vmatprep.subr.bf16.mxu0 %v1791_v21 }
 0x3fe   : > { %v524_v37 = vmul.f32 %v1563_v36, %v1561_v30 }
 0x400   : > { %1412 = vmatmul.mubr.msk.f32.vlgmr.msra.gmra.mrb[2].mxu1 %vm436_vm2, %v524_v37  ;;  %1468 = vmatpush3.bf16.msra.mxu0 %v1467_v25  ;;  %v1360_v37 = vld [vmem:[%s2184_s5] ss:$0 sm:$0xff] }
 0x401   : > { %1415 = vmatpush3.xpose.msk.msra.mxu1 %vm436_vm2, %v604_v16  ;;  %1416 = vmatprep.mubr.msk.f32.mxu1 %vm1779_vm1, %v1778_v8 }
 0x402   : > { %1419 = vmatprep.subr.mxu1 %v1778_v8 }
 0x404   : > { %1417 = vmatmul.mubr.msk.f32.vlgmr.msra.gmra.mrb[4].mxu1 %vm436_vm2, %v602_v17 }
 0x405   : > { %1421 = vmatprep.mubr.msk.f32.mxu1 %vm1779_vm1, %v1778_v8 }
 0x4ca   : > { %v842_v38 = vpop.f32.mrb[2].mxu0 }
 0x4cb   : > { %v846_v39 = vmul.f32 0.35355338, %v842_v38  ;;  %v1428_v40 = vpop.f32.mrb[3].mxu0 }
 0x4cd   : > { %v847_v41 = vsel %vm432_vm3, %v846_v39, -inf }
 0x4ce   : > { %v1009_v42 = vpop.f32.mrb[4].mxu0  ;;  %v848_v43 = vsel %vm436_vm2, %v847_v41, -inf }
 0x4cf   : > { %849 = vmax.xlane.f32.xlu0 %v848_v43  ;;  %v1438_v44 = vpop.f32.mrb[5].mxu0  ;;  %v1013_v48 = vmul.f32 0.35355338, %v1009_v42 }
 0x4d1   : > { %v1014_v53 = vsel %vm432_vm3, %v1013_v48, -inf }
 0x4d2   : > { %v1015_v54 = vsel %vm436_vm2, %v1014_v53, -inf }
 0x4d3   : > { %v2102_v45 = vpop.f32.mrb[2].mxu1 }
 0x4d4   : > { %v1413_v46 = vpop.f32.mrb[3].mxu1 }
 0x4d7   : > { %v675_v47 = vpop.f32.mrb[4].mxu1 }
 0x4d8   : > { %v679_v49 = vmul.f32 0.35355338, %v675_v47  ;;  %v1418_v50 = vpop.f32.mrb[5].mxu1 }
 0x4da   : > { %v680_v51 = vsel %vm432_vm3, %v679_v49, -inf }
 0x4db   : > { %v681_v52 = vsel %vm436_vm2, %v680_v51, -inf }
 0x4dc   : > { %682 = vmax.xlane.f32.xlu1 %v681_v52 }
 0x4e0   : > { %1016 = vmax.xlane.f32.xlu1 %v1015_v54 }
 0x55c   : > { %v850_v55 = vpop.xlane.xlu0 %849 }
 0x55d   : > { %v851_v56 = vsub.f32 %v847_v41, %v850_v55 }
 0x55f   : > { %v852_v57 = vmul.f32 1.442695, %v851_v56 }
 0x561   : > { %1564 = vpow2.f32 %v852_v57 }
 0x569   : > { %v683_v58 = vpop.xlane.xlu1 %682 }
 0x56a   : > { %v684_v2 = vsub.f32 %v680_v51, %v683_v58 }
 0x56b   : > { %v1565_v59 = vpop.eup %1564 }
 0x56c   : > { %v854_v60 = vsel %vm436_vm2, %v1565_v59, 0.0  ;;  %v685_v3 = vmul.f32 1.442695, %v684_v2 }
 0x56d   : > { %855 = vadd.xlane.f32.xlu1 %v854_v60  ;;  %v1017_v61 = vpop.xlane.xlu1 %1016 }
 0x56e   : > { %v1018_v62 = vsub.f32 %v1014_v53, %v1017_v61 }
 0x570   : > { %v1019_v63 = vmul.f32 1.442695, %v1018_v62 }
 0x572   : > { %1566 = vpow2.f32 %v1019_v63 }
 0x573   : > { %1568 = vpow2.f32 %v685_v3 }
 0x57c   : > { %v1567_v0 = vpop.eup %1566 }
 0x57d   : > { %v1021_v1 = vsel %vm436_vm2, %v1567_v0, 0.0  ;;  %v1569_v4 = vpop.eup %1568 }
 0x57e   : > { %692 = vrot.lane.b32.xlu1 %v2067_v11, %s1788_s30  ;;  %1022 = vadd.xlane.f32.xlu0 %v1021_v1  ;;  %v687_v5 = vsel %vm436_vm2, %v1569_v4, 0.0  ;;  %s1698_s30 = scalar_lea.vmem %s1697_s4, 256 }
 0x57f   : > { %p1700_p5 = scmp.lt.s32.totalorder %s1698_s30, %s1692_s16 }
 0x581   : > { %p1701_p3 = por %p1700_p5, %p1699_p4 }
 0x583   : > { %p1702_p7 = pnand %p1701_p3, %p1695_p10 }
 0x594   : > { %859 = vrot.lane.b32.xlu0 %v2067_v11, %s1789_s15 }
 0x5a2   : > { %688 = vadd.xlane.f32.xlu1 %v687_v5 }
 0x5b3   : > { %1026 = vrot.lane.b32.xlu1 %v2067_v11, %s1790_s17 }
 0x5fa   : > { %v856_v6 = vpop.xlane.xlu1 %855 }
 0x5fe   : > { %v693_v7 = vpop.permute.xlu1 %692 }
 0x5ff   : > { %1420 = vmatpush3.msra.mxu1 %v693_v7 }
 0x600   : > { %1429 = vmatprep.subr.mxu1 %v1778_v8 }
 0x60b   : > { %v1023_v10 = vpop.xlane.xlu0 %1022 }
 0x60f   : > { %v860_v15 = vpop.permute.xlu0 %859 }
 0x62f   : > { %v689_v9 = vpop.xlane.xlu1 %688 }
 0x630   : > { %1570 = vrcp.f32 %v689_v9 }
 0x631   : > { %1572 = vrcp.f32 %v856_v6 }
 0x632   : > { %1574 = vrcp.f32 %v1023_v10 }
 0x633   : > { %v1027_v17 = vpop.permute.xlu1 %1026 }
 0x63a   : > { %v1571_v12 = vpop.eup %1570 }
 0x63b   : > { %v691_v13 = vmul.f32 %v1571_v12, %v1569_v4  ;;  %v1573_v14 = vpop.eup %1572 }
 0x63c   : > { %v858_v11 = vmul.f32 %v1573_v14, %v1565_v59  ;;  %v1575_v16 = vpop.eup %1574 }
 0x63d   : > { %1422 = vmatmul.mubr.msk.f32.vlgmr.msra.gmra.mrb[6].mxu1 %vm436_vm2, %v691_v13  ;;  %v1025_v18 = vmul.f32 %v1575_v16, %v1567_v0 }
 0x63e   : > { %1430 = vmatpush3.msra.mxu1 %v860_v15  ;;  %1431 = vmatprep.mubr.msk.f32.mxu1 %vm1779_vm1, %v1778_v8 }
 0x63f   : > { %1439 = vmatprep.subr.mxu1 %v1778_v8 }
 0x641   : > { %1432 = vmatmul.mubr.msk.f32.vlgmr.msra.gmra.mrb[8].mxu1 %vm436_vm2, %v858_v11 }
 0x642   : > { %1440 = vmatpush3.msra.mxu1 %v1027_v17  ;;  %1441 = vmatprep.mubr.msk.f32.mxu1 %vm1779_vm1, %v1778_v8 }
 0x645   : > { %1442 = vmatmul.mubr.msk.f32.vlgmr.msra.gmra.mrb[10].mxu1 %vm436_vm2, %v1025_v18 }
 0x710   : > { %v764_v26 = vpop.f32.mrb[6].mxu1 }
 0x711   : > { %1103 = vrot.lane.b32.xlu1 %v764_v26, %s1792_s29  ;;  %v1423_v27 = vpop.f32.mrb[7].mxu1 }
 0x714   : > { %v931_v28 = vpop.f32.mrb[8].mxu1 }
 0x715   : > { %1107 = vrot.lane.b32.xlu0 %v931_v28, %s1793_s7  ;;  %v1433_v8 = vpop.f32.mrb[9].mxu1 }
 0x718   : > { %v1098_v29 = vpop.f32.mrb[10].mxu1 }
 0x719   : > { %1111 = vrot.lane.b32.xlu1 %v1098_v29, %s1794_s8  ;;  %v1443_v30 = vpop.f32.mrb[11].mxu1 }
 0x783   : > { %v1104_v31 = vpop.permute.xlu1 %1103 }
 0x784   : > { %v1114_v33 = vsel %vm436_vm2, %v2102_v45, %v1104_v31 }
 0x787   : > { %v1108_v32 = vpop.permute.xlu0 %1107 }
 0x788   : > { %v1116_v34 = vsel %vm1115_vm4, %v1114_v33, %v1108_v32 }
 0x78b   : > { %v1112_v35 = vpop.permute.xlu1 %1111 }
 0x78c   : > { %v1118_v36 = vsel %vm1117_vm5, %v1116_v34, %v1112_v35 }
 0x78d   : > { %1453 = vmatmul.mubr.msk.f32.vlgmr.msra.gmra.mrb[6].mxu0 %vm346_vm0, %v1118_v36 }
 0x860   : > { %v1199_v38 = vpop.f32.mrb[6].mxu0 }
 0x861   : > { %v1200_v39 = vadd.f32 %v1360_v37, %v1199_v38  ;;  %v1454_v40 = vpop.f32.mrb[7].mxu0 }
 0x863   : > { %1203 = vst.msk [vmem:[%s332_s12] sm:$0xff] %vm346_vm0, %v1200_v39 }
 0x864   : > { %1705 = shalt.err (!%p1702_p7)
}
 0x865   : > { %s1706_s20 = scalar_lea.hbm %s2134_s10, 128  ;;  %s1710_s29 = scalar_lea.hbm %s2185_s6, 256 }
 0x866   : > { %p1707_p1 = scmp.ne.s32.totalorder %s2134_s10, %s1706_s20  ;;  %p1711_p0 = scmp.lt.u32.totalorder %s2134_s10, %s2185_s6 }
 0x867   : > { %p1712_p9 = scmp.lt.u32.totalorder %s1710_s29, %s1706_s20  ;;  %p1714_p2 = scmp.lt.u32.totalorder %s1706_s20, %s2134_s10 }
 0x868   : > { %p1708_p8 = pnand %p1707_p1, %p2208_p13 }
 0x869   : > { %p1713_p12 = por %p1712_p9, %p1711_p0 }
 0x86a   : > { %p1709_p11 = pneg %p1708_p8 }
 0x86b   : > { %p1715_p6 = por %p1714_p2, %p1713_p12 }
 0x86d   : > { %p1716_p10 = pnand %p1715_p6, %p1709_p11 }
 0x86f   : > { %1719 = shalt.err (!%p1716_p10)
}
 0x870   : > { %1481 = dma.vmem_to_hbm [thread:$0]  (%p2208_p13), %s2136_s2, 128, %s2134_s10, %s1205_s14  }
 0x871 PF: > { %s1230_s27 = sand.u32 1, %s1758_s21   ;;  %p2209_p4 = scmp.ne.s32.totalorder %s2193_s28, 0 }
 0x872   : > { %p2210_p5 = scmp.ge.s32.totalorder %s1770_s24, 2  ;;  %s1231_s18 = scalar_lea.sflag [#allocation4], %s1230_s27 }
 0x874   : > { %p1498_p3 = pnand %p2210_p5, %p2209_p4 }
 0x876   : > { %1753 = dma.done.wait (!%p1498_p3), %s1231_s18, 128  }
 0x877   : > { %1755 = vsyncadd (!%p1498_p3), %s1231_s18, 4294967168  ;;  %s2211_s13 = sld [smem:[#allocation16_spill]]  ;;  %p23_p7 = scmp.ge.s32.totalorder %s1941_s26, 4  }
 0x878   : > { %s2212_s21 = smov %s1762_s22  ;;  %s2213_s22 = smov %s1766_s23 }
 0x879   : > { %s2215_s24 = smov %s1941_s26  ;;  %25 = sbr.rel (!%p23_p7) target bundleno = 11 (0xb), region = 110 }
 0x87d   : > { %s2214_s23 = smov %s2211_s13 }
 0x880   :  { %1236 = vsyncpa [#allocation3], 1 }
 0x881   :  { %1238 = vsyncpa [#allocation3 + $0x1], 1 }
 0x882   :  { %1239 = vsyncpa [#allocation6], 1 }
 0x883   :  { %1241 = vsyncpa [#allocation6 + $0x1], 1 }
 0x884   :  { %1242 = vsyncpa [#allocation9], 1 }
 0x885   :  { %1243 = vsyncpa [#allocation4], 1 }
 0x886   :  { %1245 = vsyncpa [#allocation4 + $0x1], 1 }

</bundles_post_ra>
